<compile_context>
chip_gen: v5e
topology: v5e:2x2
jax: 0.10.0
libtpu: 0.0.40
codegen_flags: <defaults>
</compile_context>

<pallas_src>
import functools

import numpy as np
import jax
import jax.numpy as jnp
from jax import lax
from jax.experimental import pallas as pl
from jax.experimental.pallas import tpu as pltpu

NEG_SLOPE = 0.1      # F.leaky_relu(x, 0.1)
TOPK = 20            # torch.topk(defen, k=20)
EPS = 1e-5
PAD = 128            # lane width every activation / weight tile is padded to
NUM_LAYERS = 6


def _ae_kernel(io_ref, w_ref, out_ref, *, batch, dim_data, dim_z):
    # io_ref : (2B+6, 128) f32  rows [0:B]=x_pad, [B:2B]=data_input^T pad, [2B:2B+6]=biases
    # w_ref  : (6, 128, 128) bf16 zero-padded weights (see pack_params for lane offsets)
    # out_ref: (B, 128) f32  y in [:, :Dd], z in [:, Dd:Dd+Dz], loss in [:, Dd+Dz]
    B = batch
    x = io_ref[0:B, :]                               # (B,128) f32, zero beyond Dd
    d = io_ref[B:2 * B, :]                           # (B,128) f32 = data_input^T, zero-padded
    bias = io_ref[2 * B:2 * B + NUM_LAYERS, :]       # (6,128) f32

    def lrelu(v):
        return jnp.maximum(v, NEG_SLOPE * v)

    def layer(v, k):
        # bf16 MXU operands (weights already bf16), f32 accumulation.
        return jnp.dot(v.astype(jnp.bfloat16), w_ref[k],
                       preferred_element_type=jnp.float32) + bias[k:k + 1, :]

    # ---- MLP_encoder ----
    h = lrelu(layer(x, 0))
    h = lrelu(layer(h, 1))
    z = layer(h, 2)                  # real values already live in lanes [Dd, Dd+Dz)
    # ---- MLP_decoder ----
    g = lrelu(layer(z, 3))
    g = lrelu(layer(g, 4))
    y = jnp.tanh(layer(g, 5))        # real values in lanes [0, Dd)

    # ---- my_loss(y_true=x, y_pred=y, data_input) ----
    A = jnp.sum(y * d, axis=1, keepdims=True)                       # (B,1)
    Bn = jnp.sqrt(jnp.sum(y * y, axis=1, keepdims=True))            # (B,1) per-row ||y||_2
    C = jnp.sqrt(jnp.sum(d * d, keepdims=True))                     # (1,1) ||d||_F
    defen = A * pl.reciprocal(Bn * C + EPS, approx=True)            # (B,1)

    # Constant-depth top-k sum via ranks.  defen is broadcast to both (B,B)
    # orientations with two tiny MXU matmuls against diag(defen); strict
    # tie-break by index selects exactly TOPK elements (sum is tie-invariant).
    row_i = lax.broadcasted_iota(jnp.int32, (B, B), 0)
    col_j = lax.broadcasted_iota(jnp.int32, (B, B), 1)
    diag = jnp.where(row_i == col_j, defen, 0.0)                    # (B,B) diag(defen)
    ones_bb = jnp.ones((B, B), jnp.float32)
    d_j = jnp.dot(ones_bb, diag, preferred_element_type=jnp.float32)  # [i,j]=defen[j]
    d_i = jnp.dot(diag, ones_bb, preferred_element_type=jnp.float32)  # [i,j]=defen[i]
    beats = jnp.logical_or(d_j > d_i,
                           jnp.logical_and(d_j == d_i, col_j < row_i))
    rank = jnp.sum(beats.astype(jnp.float32), axis=1, keepdims=True)  # (B,1)
    sel = (rank < float(TOPK)).astype(jnp.float32)
    sam = jnp.sum(defen * sel, keepdims=True)                       # (1,1) sum(topk)

    diff = y - x                                                    # padded lanes cancel
    mse = jnp.sum(diff * diff, keepdims=True) * (1.0 / (B * dim_data))
    loss = mse + 0.1 * sam                                          # (1,1)

    # Single lane-dense store: y | z | loss packed into one (B,128) slab.
    lane = lax.broadcasted_iota(jnp.int32, (B, PAD), 1)
    out_ref[...] = y + z + jnp.where(lane == dim_data + dim_z, loss, 0.0)


def init_params(key, dim_data, dim_z, n_hidden):
    """Deterministic PyTorch-style nn.Linear init (uniform +-1/sqrt(fan_in))."""
    layers = [("e1", dim_data, n_hidden), ("e2", n_hidden, n_hidden),
              ("e3", n_hidden, dim_z),
              ("d1", dim_z, n_hidden), ("d2", n_hidden, n_hidden),
              ("d3", n_hidden, dim_data)]
    params = {}
    for name, fan_in, fan_out in layers:
        key, kw, kb = jax.random.split(key, 3)
        bound = 1.0 / float(np.sqrt(fan_in))
        w = jax.random.uniform(kw, (fan_out, fan_in), jnp.float32, -bound, bound)
        b = jax.random.uniform(kb, (fan_out,), jnp.float32, -bound, bound)
        params["w" + name] = jnp.transpose(w)            # (in, out) layout
        params["b" + name] = b.reshape(1, fan_out)
    return params


def pack_params(params, dim_data, dim_z, n_hidden):
    """Pack 12 weight/bias arrays into one bf16 weight slab + one f32 bias block.

    encoder3's output columns / decoder1's input rows are placed at lane offset
    dim_data so z lands directly in out[:, dim_data:dim_data+dim_z]."""
    assert max(dim_data, dim_z, n_hidden) <= PAD
    assert dim_data + dim_z < PAD, "need a spare lane for the packed loss column"
    layout = [("e1", dim_data, n_hidden, 0, 0),
              ("e2", n_hidden, n_hidden, 0, 0),
              ("e3", n_hidden, dim_z, 0, dim_data),
              ("d1", dim_z, n_hidden, dim_data, 0),
              ("d2", n_hidden, n_hidden, 0, 0),
              ("d3", n_hidden, dim_data, 0, 0)]
    w_slab = np.zeros((NUM_LAYERS, PAD, PAD), np.float32)
    b_rows = np.zeros((NUM_LAYERS, PAD), np.float32)
    for k, (name, fi, fo, ri, ci) in enumerate(layout):
        w_slab[k, ri:ri + fi, ci:ci + fo] = np.asarray(params["w" + name])
        b_rows[k, ci:ci + fo] = np.asarray(params["b" + name]).reshape(fo)
    return jnp.asarray(w_slab, dtype=jnp.bfloat16), jnp.asarray(b_rows, dtype=jnp.float32)


@functools.partial(jax.jit, static_argnames=("dim_z",))
def ae_forward(x, data_input, w_slab, b_rows, *, dim_z):
    B, Dd = x.shape
    assert B >= TOPK, "torch.topk(k=20) requires batch >= 20"
    assert Dd + dim_z < PAD

    x_pad = jnp.zeros((B, PAD), jnp.float32).at[:, :Dd].set(x)
    d_pad = jnp.zeros((B, PAD), jnp.float32).at[:, :Dd].set(jnp.transpose(data_input))
    io_slab = jnp.concatenate([x_pad, d_pad, b_rows], axis=0)       # (2B+6, 128) f32

    kernel = functools.partial(_ae_kernel, batch=B, dim_data=Dd, dim_z=dim_z)
    vmem = pl.BlockSpec(memory_space=pltpu.MemorySpace.VMEM)
    out = pl.pallas_call(
        kernel,
        out_shape=jax.ShapeDtypeStruct((B, PAD), jnp.float32),
        in_specs=[vmem, vmem],
        out_specs=vmem,
    )(io_slab, w_slab)

    y = out[:, :Dd]
    z = out[:, Dd:Dd + dim_z]
    loss = out[0, Dd + dim_z]
    return y, z, loss


def ae_reference(x, data_input, params):
    """Pure-JAX f32 reference mirroring the PyTorch forward."""
    def lrelu(v): return jnp.where(v > 0, v, NEG_SLOPE * v)
    def lin(v, w, b): return jnp.dot(v, w, precision=lax.Precision.HIGHEST) + b
    h1 = lrelu(lin(x, params["we1"], params["be1"]))
    h2 = lrelu(lin(h1, params["we2"], params["be2"]))
    z = lin(h2, params["we3"], params["be3"])
    g1 = lrelu(lin(z, params["wd1"], params["bd1"]))
    g2 = lrelu(lin(g1, params["wd2"], params["bd2"]))
    y = jnp.tanh(lin(g2, params["wd3"], params["bd3"]))
    d = data_input.T
    A = jnp.sum(y * d, axis=1)
    Bn = jnp.linalg.norm(y, axis=1)
    C = jnp.linalg.norm(d)
    defen = A / (Bn * C + EPS)
    sam = jnp.sum(lax.top_k(defen, TOPK)[0])
    mse = jnp.mean((y - x) ** 2)
    return y, z, mse + 0.1 * sam


if __name__ == "__main__":
    # Small shapes consistent with the module; batch must be >= 20 for topk(k=20).
    batch, dim_data, dim_z, n_hidden = 32, 64, 16, 128

    key = jax.random.PRNGKey(0)
    kx, kd, kp = jax.random.split(key, 3)
    x = jax.random.normal(kx, (batch, dim_data), jnp.float32)
    data_input = jax.random.normal(kd, (dim_data, batch), jnp.float32)
    params = init_params(kp, dim_data, dim_z, n_hidden)
    w_slab, b_rows = pack_params(params, dim_data, dim_z, n_hidden)

    y, z, r_loss = jax.block_until_ready(
        ae_forward(x, data_input, w_slab, b_rows, dim_z=dim_z))

    # Tolerances account for deliberate bf16 MXU operands (f32 accumulation) and
    # the approximate EUP reciprocal versus the f32 HIGHEST-precision reference.
    y_ref, z_ref, loss_ref = ae_reference(x, data_input, params)
    np.testing.assert_allclose(np.asarray(y), np.asarray(y_ref), rtol=1e-2, atol=2e-2)
    np.testing.assert_allclose(np.asarray(z), np.asarray(z_ref), rtol=1e-2, atol=2e-2)
    np.testing.assert_allclose(np.asarray(r_loss), np.asarray(loss_ref), rtol=1e-2, atol=2e-2)

    print("KERNEL_OK")
</pallas_src>

<mosaic_0001>
module attributes {stable_mosaic.version = 11 : i64} {
  func.func @_ae_kernel(%arg0: memref<70x128xf32, #tpu.memory_space<vmem>>, %arg1: memref<6x128x128xbf16, #tpu.memory_space<vmem>>, %arg2: memref<32x128xf32, #tpu.memory_space<vmem>>) attributes {dimension_semantics = [], scalar_prefetch = 0 : i64, scratch_operands = 0 : i64, tpu.core_type = #tpu.core_type<tc>} {
    %c0 = arith.constant 0 : index
    %c0_0 = arith.constant 0 : index
    %0 = vector.load %arg0[%c0, %c0_0] : memref<70x128xf32, #tpu.memory_space<vmem>>, vector<32x128xf32>
    %c32 = arith.constant 32 : index
    %c0_1 = arith.constant 0 : index
    %1 = vector.load %arg0[%c32, %c0_1] : memref<70x128xf32, #tpu.memory_space<vmem>>, vector<32x128xf32>
    %c64 = arith.constant 64 : index
    %c0_2 = arith.constant 0 : index
    %2 = vector.load %arg0[%c64, %c0_2] : memref<70x128xf32, #tpu.memory_space<vmem>>, vector<6x128xf32>
    %3 = arith.truncf %0 : vector<32x128xf32> to vector<32x128xbf16>
    %c0_3 = arith.constant 0 : index
    %c0_4 = arith.constant 0 : index
    %c0_5 = arith.constant 0 : index
    %4 = vector.load %arg1[%c0_3, %c0_4, %c0_5] : memref<6x128x128xbf16, #tpu.memory_space<vmem>>, vector<1x128x128xbf16>
    %5 = vector.shape_cast %4 : vector<1x128x128xbf16> to vector<128x128xbf16>
    %cst = arith.constant dense<0.000000e+00> : vector<32x128xf32>
    %6 = tpu.matmul %3, %5, %cst {dimension_numbers = #tpu.dot_dimension_numbers<[1], [0], [0], [1], [0, 0, 1, 1], [], []>} : vector<32x128xbf16>, vector<128x128xbf16>, vector<32x128xf32> -> vector<32x128xf32>
    %7 = vector.extract_strided_slice %2 {offsets = [0, 0], sizes = [1, 128], strides = [1, 1]} : vector<6x128xf32> to vector<1x128xf32>
    %8 = vector.broadcast %7 : vector<1x128xf32> to vector<32x128xf32>
    %9 = arith.addf %6, %8 : vector<32x128xf32>
    %cst_6 = arith.constant 1.000000e-01 : f32
    %10 = vector.broadcast %cst_6 : f32 to vector<32x128xf32>
    %11 = arith.mulf %10, %9 : vector<32x128xf32>
    %12 = arith.maximumf %9, %11 : vector<32x128xf32>
    %13 = arith.truncf %12 : vector<32x128xf32> to vector<32x128xbf16>
    %c1 = arith.constant 1 : index
    %c0_7 = arith.constant 0 : index
    %c0_8 = arith.constant 0 : index
    %14 = vector.load %arg1[%c1, %c0_7, %c0_8] : memref<6x128x128xbf16, #tpu.memory_space<vmem>>, vector<1x128x128xbf16>
    %15 = vector.shape_cast %14 : vector<1x128x128xbf16> to vector<128x128xbf16>
    %cst_9 = arith.constant dense<0.000000e+00> : vector<32x128xf32>
    %16 = tpu.matmul %13, %15, %cst_9 {dimension_numbers = #tpu.dot_dimension_numbers<[1], [0], [0], [1], [0, 0, 1, 1], [], []>} : vector<32x128xbf16>, vector<128x128xbf16>, vector<32x128xf32> -> vector<32x128xf32>
    %17 = vector.extract_strided_slice %2 {offsets = [1, 0], sizes = [1, 128], strides = [1, 1]} : vector<6x128xf32> to vector<1x128xf32>
    %18 = vector.broadcast %17 : vector<1x128xf32> to vector<32x128xf32>
    %19 = arith.addf %16, %18 : vector<32x128xf32>
    %cst_10 = arith.constant 1.000000e-01 : f32
    %20 = vector.broadcast %cst_10 : f32 to vector<32x128xf32>
    %21 = arith.mulf %20, %19 : vector<32x128xf32>
    %22 = arith.maximumf %19, %21 : vector<32x128xf32>
    %23 = arith.truncf %22 : vector<32x128xf32> to vector<32x128xbf16>
    %c2 = arith.constant 2 : index
    %c0_11 = arith.constant 0 : index
    %c0_12 = arith.constant 0 : index
    %24 = vector.load %arg1[%c2, %c0_11, %c0_12] : memref<6x128x128xbf16, #tpu.memory_space<vmem>>, vector<1x128x128xbf16>
    %25 = vector.shape_cast %24 : vector<1x128x128xbf16> to vector<128x128xbf16>
    %cst_13 = arith.constant dense<0.000000e+00> : vector<32x128xf32>
    %26 = tpu.matmul %23, %25, %cst_13 {dimension_numbers = #tpu.dot_dimension_numbers<[1], [0], [0], [1], [0, 0, 1, 1], [], []>} : vector<32x128xbf16>, vector<128x128xbf16>, vector<32x128xf32> -> vector<32x128xf32>
    %27 = vector.extract_strided_slice %2 {offsets = [2, 0], sizes = [1, 128], strides = [1, 1]} : vector<6x128xf32> to vector<1x128xf32>
    %28 = vector.broadcast %27 : vector<1x128xf32> to vector<32x128xf32>
    %29 = arith.addf %26, %28 : vector<32x128xf32>
    %30 = arith.truncf %29 : vector<32x128xf32> to vector<32x128xbf16>
    %c3 = arith.constant 3 : index
    %c0_14 = arith.constant 0 : index
    %c0_15 = arith.constant 0 : index
    %31 = vector.load %arg1[%c3, %c0_14, %c0_15] : memref<6x128x128xbf16, #tpu.memory_space<vmem>>, vector<1x128x128xbf16>
    %32 = vector.shape_cast %31 : vector<1x128x128xbf16> to vector<128x128xbf16>
    %cst_16 = arith.constant dense<0.000000e+00> : vector<32x128xf32>
    %33 = tpu.matmul %30, %32, %cst_16 {dimension_numbers = #tpu.dot_dimension_numbers<[1], [0], [0], [1], [0, 0, 1, 1], [], []>} : vector<32x128xbf16>, vector<128x128xbf16>, vector<32x128xf32> -> vector<32x128xf32>
    %34 = vector.extract_strided_slice %2 {offsets = [3, 0], sizes = [1, 128], strides = [1, 1]} : vector<6x128xf32> to vector<1x128xf32>
    %35 = vector.broadcast %34 : vector<1x128xf32> to vector<32x128xf32>
    %36 = arith.addf %33, %35 : vector<32x128xf32>
    %cst_17 = arith.constant 1.000000e-01 : f32
    %37 = vector.broadcast %cst_17 : f32 to vector<32x128xf32>
    %38 = arith.mulf %37, %36 : vector<32x128xf32>
    %39 = arith.maximumf %36, %38 : vector<32x128xf32>
    %40 = arith.truncf %39 : vector<32x128xf32> to vector<32x128xbf16>
    %c4 = arith.constant 4 : index
    %c0_18 = arith.constant 0 : index
    %c0_19 = arith.constant 0 : index
    %41 = vector.load %arg1[%c4, %c0_18, %c0_19] : memref<6x128x128xbf16, #tpu.memory_space<vmem>>, vector<1x128x128xbf16>
    %42 = vector.shape_cast %41 : vector<1x128x128xbf16> to vector<128x128xbf16>
    %cst_20 = arith.constant dense<0.000000e+00> : vector<32x128xf32>
    %43 = tpu.matmul %40, %42, %cst_20 {dimension_numbers = #tpu.dot_dimension_numbers<[1], [0], [0], [1], [0, 0, 1, 1], [], []>} : vector<32x128xbf16>, vector<128x128xbf16>, vector<32x128xf32> -> vector<32x128xf32>
    %44 = vector.extract_strided_slice %2 {offsets = [4, 0], sizes = [1, 128], strides = [1, 1]} : vector<6x128xf32> to vector<1x128xf32>
    %45 = vector.broadcast %44 : vector<1x128xf32> to vector<32x128xf32>
    %46 = arith.addf %43, %45 : vector<32x128xf32>
    %cst_21 = arith.constant 1.000000e-01 : f32
    %47 = vector.broadcast %cst_21 : f32 to vector<32x128xf32>
    %48 = arith.mulf %47, %46 : vector<32x128xf32>
    %49 = arith.maximumf %46, %48 : vector<32x128xf32>
    %50 = arith.truncf %49 : vector<32x128xf32> to vector<32x128xbf16>
    %c5 = arith.constant 5 : index
    %c0_22 = arith.constant 0 : index
    %c0_23 = arith.constant 0 : index
    %51 = vector.load %arg1[%c5, %c0_22, %c0_23] : memref<6x128x128xbf16, #tpu.memory_space<vmem>>, vector<1x128x128xbf16>
    %52 = vector.shape_cast %51 : vector<1x128x128xbf16> to vector<128x128xbf16>
    %cst_24 = arith.constant dense<0.000000e+00> : vector<32x128xf32>
    %53 = tpu.matmul %50, %52, %cst_24 {dimension_numbers = #tpu.dot_dimension_numbers<[1], [0], [0], [1], [0, 0, 1, 1], [], []>} : vector<32x128xbf16>, vector<128x128xbf16>, vector<32x128xf32> -> vector<32x128xf32>
    %54 = vector.extract_strided_slice %2 {offsets = [5, 0], sizes = [1, 128], strides = [1, 1]} : vector<6x128xf32> to vector<1x128xf32>
    %55 = vector.broadcast %54 : vector<1x128xf32> to vector<32x128xf32>
    %56 = arith.addf %53, %55 : vector<32x128xf32>
    %57 = math.tanh %56 : vector<32x128xf32>
    %58 = arith.mulf %57, %1 : vector<32x128xf32>
    %cst_25 = arith.constant dense<0.000000e+00> : vector<32xf32>
    %59 = vector.multi_reduction <add>, %58, %cst_25 [1] : vector<32x128xf32> to vector<32xf32>
    %60 = vector.shape_cast %59 : vector<32xf32> to vector<32x1xf32>
    %61 = arith.mulf %57, %57 : vector<32x128xf32>
    %cst_26 = arith.constant dense<0.000000e+00> : vector<32xf32>
    %62 = vector.multi_reduction <add>, %61, %cst_26 [1] : vector<32x128xf32> to vector<32xf32>
    %63 = vector.shape_cast %62 : vector<32xf32> to vector<32x1xf32>
    %64 = math.sqrt %63 : vector<32x1xf32>
    %65 = arith.mulf %1, %1 : vector<32x128xf32>
    %66 = vector.shape_cast %65 : vector<32x128xf32> to vector<1x32x128xf32>
    %cst_27 = arith.constant dense<0.000000e+00> : vector<1xf32>
    %67 = vector.multi_reduction <add>, %66, %cst_27 [1, 2] : vector<1x32x128xf32> to vector<1xf32>
    %68 = vector.shape_cast %67 : vector<1xf32> to vector<1x1x1xf32>
    %69 = vector.extract %68[0, 0, 0] : f32 from vector<1x1x1xf32>
    %70 = vector.broadcast %69 : f32 to vector<1x1xf32>
    %71 = math.sqrt %70 : vector<1x1xf32>
    %72 = vector.broadcast %71 : vector<1x1xf32> to vector<32x1xf32>
    %73 = arith.mulf %64, %72 : vector<32x1xf32>
    %cst_28 = arith.constant 9.99999974E-6 : f32
    %74 = vector.broadcast %cst_28 : f32 to vector<32x1xf32>
    %75 = arith.addf %73, %74 : vector<32x1xf32>
    %76 = tpu.reciprocal %75 {approx = true} : vector<32x1xf32> -> vector<32x1xf32>
    %77 = arith.mulf %60, %76 : vector<32x1xf32>
    %78 = tpu.iota {dimensions = array<i32: 0>} : vector<32x32xi32>
    %79 = tpu.iota {dimensions = array<i32: 1>} : vector<32x32xi32>
    %80 = arith.cmpi eq, %78, %79 : vector<32x32xi32>
    %cst_29 = arith.constant 0.000000e+00 : f32
    %81 = vector.shape_cast %77 : vector<32x1xf32> to vector<32x1xf32>
    %82 = vector.broadcast %81 : vector<32x1xf32> to vector<32x32xf32>
    %83 = vector.broadcast %cst_29 : f32 to vector<32x32xf32>
    %84 = arith.select %80, %82, %83 : vector<32x32xi1>, vector<32x32xf32>
    %cst_30 = arith.constant 1.000000e+00 : f32
    %85 = vector.broadcast %cst_30 : f32 to vector<32x32xf32>
    %cst_31 = arith.constant dense<0.000000e+00> : vector<32x32xf32>
    %86 = tpu.matmul %85, %84, %cst_31 {dimension_numbers = #tpu.dot_dimension_numbers<[1], [0], [0], [1], [0, 0, 1, 1], [], []>} : vector<32x32xf32>, vector<32x32xf32>, vector<32x32xf32> -> vector<32x32xf32>
    %cst_32 = arith.constant dense<0.000000e+00> : vector<32x32xf32>
    %87 = tpu.matmul %84, %85, %cst_32 {dimension_numbers = #tpu.dot_dimension_numbers<[1], [0], [0], [1], [0, 0, 1, 1], [], []>} : vector<32x32xf32>, vector<32x32xf32>, vector<32x32xf32> -> vector<32x32xf32>
    %88 = arith.cmpf ogt, %86, %87 : vector<32x32xf32>
    %89 = arith.cmpf oeq, %86, %87 : vector<32x32xf32>
    %90 = arith.cmpi slt, %79, %78 : vector<32x32xi32>
    %91 = arith.andi %89, %90 : vector<32x32xi1>
    %92 = arith.ori %88, %91 : vector<32x32xi1>
    %93 = arith.extui %92 : vector<32x32xi1> to vector<32x32xi32>
    %94 = arith.sitofp %93 : vector<32x32xi32> to vector<32x32xf32>
    %cst_33 = arith.constant dense<0.000000e+00> : vector<32xf32>
    %95 = vector.multi_reduction <add>, %94, %cst_33 [1] : vector<32x32xf32> to vector<32xf32>
    %96 = vector.shape_cast %95 : vector<32xf32> to vector<32x1xf32>
    %cst_34 = arith.constant 2.000000e+01 : f32
    %97 = vector.broadcast %cst_34 : f32 to vector<32x1xf32>
    %98 = arith.cmpf olt, %96, %97 : vector<32x1xf32>
    %99 = arith.extui %98 : vector<32x1xi1> to vector<32x1xi32>
    %100 = arith.sitofp %99 : vector<32x1xi32> to vector<32x1xf32>
    %101 = arith.mulf %77, %100 : vector<32x1xf32>
    %102 = vector.shape_cast %101 : vector<32x1xf32> to vector<1x32x1xf32>
    %cst_35 = arith.constant dense<0.000000e+00> : vector<1xf32>
    %103 = vector.multi_reduction <add>, %102, %cst_35 [1, 2] : vector<1x32x1xf32> to vector<1xf32>
    %104 = vector.shape_cast %103 : vector<1xf32> to vector<1x1x1xf32>
    %105 = vector.extract %104[0, 0, 0] : f32 from vector<1x1x1xf32>
    %106 = vector.broadcast %105 : f32 to vector<1x1xf32>
    %107 = arith.subf %57, %0 : vector<32x128xf32>
    %108 = arith.mulf %107, %107 : vector<32x128xf32>
    %109 = vector.shape_cast %108 : vector<32x128xf32> to vector<1x32x128xf32>
    %cst_36 = arith.constant dense<0.000000e+00> : vector<1xf32>
    %110 = vector.multi_reduction <add>, %109, %cst_36 [1, 2] : vector<1x32x128xf32> to vector<1xf32>
    %111 = vector.shape_cast %110 : vector<1xf32> to vector<1x1x1xf32>
    %112 = vector.extract %111[0, 0, 0] : f32 from vector<1x1x1xf32>
    %113 = vector.broadcast %112 : f32 to vector<1x1xf32>
    %cst_37 = arith.constant 4.8828125E-4 : f32
    %114 = vector.broadcast %cst_37 : f32 to vector<1x1xf32>
    %115 = arith.mulf %113, %114 : vector<1x1xf32>
    %cst_38 = arith.constant 1.000000e-01 : f32
    %116 = vector.broadcast %cst_38 : f32 to vector<1x1xf32>
    %117 = arith.mulf %116, %106 : vector<1x1xf32>
    %118 = arith.addf %115, %117 : vector<1x1xf32>
    %119 = tpu.iota {dimensions = array<i32: 1>} : vector<32x128xi32>
    %120 = arith.addf %57, %29 : vector<32x128xf32>
    %c80_i32 = arith.constant 80 : i32
    %121 = vector.broadcast %c80_i32 : i32 to vector<32x128xi32>
    %122 = arith.cmpi eq, %119, %121 : vector<32x128xi32>
    %cst_39 = arith.constant 0.000000e+00 : f32
    %123 = vector.shape_cast %118 : vector<1x1xf32> to vector<1x1xf32>
    %124 = vector.broadcast %123 : vector<1x1xf32> to vector<32x128xf32>
    %125 = vector.broadcast %cst_39 : f32 to vector<32x128xf32>
    %126 = arith.select %122, %124, %125 : vector<32x128xi1>, vector<32x128xf32>
    %127 = arith.addf %120, %126 : vector<32x128xf32>
    %c0_40 = arith.constant 0 : index
    %c0_41 = arith.constant 0 : index
    %128 = vector.load %arg2[%c0_40, %c0_41] : memref<32x128xf32, #tpu.memory_space<vmem>>, vector<32x128xf32>
    tpu.vector_store %arg2[%c0_40, %c0_41], %127 {strides = array<i32>} : memref<32x128xf32, #tpu.memory_space<vmem>>, vector<32x128xf32>,
    return
  }
}

</mosaic_0001>

<bundles_post_ra>
// kernel: ae_forward.1
= control target key start
LH: loop header
LB: loop body
LE: loop exit
PB: predicated region body
PF: predicated region fallthrough
CT: control target
= control target key end

     0   :  { %7 = vsyncpa [#allocation3], 0  ;;  %s1239_s12 = smov [#allocation2]   ;;  %s1240_s14 = smov 64   ;;  %s1475_s0 = inlined_call_operand.vmem [shape: f32[70,128], index: 0, kind: input, shape index: {}]   ;;  %s1476_s1 = inlined_call_operand.hbm [shape: bf16[6,128,128], index: 1, kind: input, shape index: {}]   ;;  %s1477_s2 = inlined_call_operand.vmem [shape: f32[32,128], index: 2, kind: output, shape index: {}]  }
   0x1   :  { %s14_s11 = sshll.u32 %s1476_s1, 4  ;;  %s16_s13 = sshll.u32 %s1239_s12, 4  ;;  %s15_s11 = int_to_ptr.hbm [resolvable:$true] %s14_s11  ;;  %s17_s13 = int_to_ptr.vmem [resolvable:$true] %s16_s13 }
   0x2   :  { %s1241_s15 = smov 4  }
   0x3   :  { %22 = dma.hbm_to_vmem [thread:$0]  %s15_s11, 6144, %s17_s13, [#allocation3], %s1240_s14, %s1240_s14, %s1241_s15  }
   0x4   :  { %1237 = dma.done.wait [#allocation3], 6144  }
   0x5   :  { %1238 = vsyncadd [#allocation3], 4294961152  ;;  %v1135_v0 = vld [vmem:[#allocation2 + $0x38] sm:$0xff]  ;;  %v1134_v1 = vld [vmem:[#allocation2 + $0x30] sm:$0xff]  ;;  %vm725_vm5 = vcmask 261120  }
   0x6   :  { %103 = vmatpush.bf16.msra.mxu0 %v1135_v0  ;;  %v1133_v2 = vld [vmem:[#allocation2 + $0x28] sm:$0xff]  ;;  %v1132_v3 = vld [vmem:[#allocation2 + $0x20] sm:$0xff]  ;;  %v1131_v4 = vld [vmem:[#allocation2 + $0x18] sm:$0xff] }
   0x7   :  { %v1143_v5 = vld [vmem:[#allocation2 + $0x78] sm:$0xff]  ;;  %v1130_v6 = vld [vmem:[#allocation2 + $0x10] sm:$0xff]  ;;  %v1129_v8 = vld [vmem:[#allocation2 + $0x8] sm:$0xff] }
   0x8   :  { %198 = vmatpush.bf16.msra.mxu1 %v1143_v5  ;;  %v1142_v7 = vld [vmem:[#allocation2 + $0x70] sm:$0xff]  ;;  %v1141_v9 = vld [vmem:[#allocation2 + $0x68] sm:$0xff]  ;;  %v1128_v10 = vld [vmem:[#allocation2] sm:$0xff] }
   0x9   :  { %v1265_v11 = vld [vmem:[%s1475_s0] sm:$0xff]  ;;  %v1270_v12 = vld [vmem:[%s1475_s0 + $0x8] sm:$0xff]  ;;  %v1277_v15 = vld [vmem:[%s1475_s0 + $0x10] sm:$0xff] }
   0xa   :  { %104 = vmatpush.bf16.msra.mxu0 %v1134_v1  ;;  %v1140_v13 = vld [vmem:[#allocation2 + $0x60] sm:$0xff]  ;;  %v36_v14 = vpack.c.bf16 %v1270_v12, %v1265_v11  ;;  %v1282_v16 = vld [vmem:[%s1475_s0 + $0x18] sm:$0xff]  ;;  %v1138_v19 = vld [vmem:[#allocation2 + $0x50] sm:$0xff] }
   0xb   :  { %v37_v17 = vpack.c.bf16 %v1282_v16, %v1277_v15  ;;  %v1139_v18 = vld [vmem:[#allocation2 + $0x58] sm:$0xff]  ;;  %v1137_v20 = vld [vmem:[#allocation2 + $0x48] sm:$0xff]  ;;  %v1136_v21 = vld [vmem:[#allocation2 + $0x40] sm:$0xff] }
   0xc   :  { %199 = vmatpush.bf16.msra.mxu1 %v1142_v7  ;;  %v1289_v22 = vld [vmem:[%s1475_s0 + $0x40] sm:$0x3f]  ;;  %v1151_v25 = vld [vmem:[#allocation2 + $0xb8] sm:$0xff]  ;;  %v1150_v26 = vld [vmem:[#allocation2 + $0xb0] sm:$0xff] }
   0xd   :  { %v54_v24 = vperm.slane %v1289_v22, 0  ;;  %293 = vmatpush.bf16.msra.mxu2 %v1151_v25  ;;  %v1149_v28 = vld [vmem:[#allocation2 + $0xa8] sm:$0xff]  ;;  %v1148_v33 = vld [vmem:[#allocation2 + $0xa0] sm:$0xff]  ;;  %v1147_v46 = vld [vmem:[#allocation2 + $0x98] sm:$0xff]  ;;  %v149_v51 = vperm.slane %v1289_v22, 1 }
   0xe   :  { %105 = vmatpush.bf16.msra.mxu0 %v1133_v2  ;;  %v1146_v47 = vld [vmem:[#allocation2 + $0x90] sm:$0xff]  ;;  %v1145_v48 = vld [vmem:[#allocation2 + $0x88] sm:$0xff]  ;;  %v1144_v49 = vld [vmem:[#allocation2 + $0x80] sm:$0xff] }
   0xf   :  { %v1159_v52 = vld [vmem:[#allocation2 + $0xf8] sm:$0xff]  ;;  %v1158_v53 = vld [vmem:[#allocation2 + $0xf0] sm:$0xff]  ;;  %v1157_v55 = vld [vmem:[#allocation2 + $0xe8] sm:$0xff] }
  0x10   :  { %200 = vmatpush.bf16.msra.mxu1 %v1141_v9  ;;  %380 = vmatpush.bf16.msra.mxu3 %v1159_v52  ;;  %v1156_v60 = vld [vmem:[#allocation2 + $0xe0] sm:$0xff]  ;;  %v1155_v0 = vld [vmem:[#allocation2 + $0xd8] sm:$0xff] }
  0x11   :  { %294 = vmatpush.bf16.msra.mxu2 %v1150_v26 }
  0x12   :  { %106 = vmatpush.bf16.msra.mxu0 %v1132_v3 }
  0x14   :  { %201 = vmatpush.bf16.msra.mxu1 %v1140_v13  ;;  %381 = vmatpush.bf16.msra.mxu3 %v1158_v53  ;;  %v1153_v13 = vld [vmem:[#allocation2 + $0xc8] sm:$0xff] }
  0x15   :  { %295 = vmatpush.bf16.msra.mxu2 %v1149_v28 }
  0x16   :  { %107 = vmatpush.bf16.msra.mxu0 %v1131_v4 }
  0x18   :  { %202 = vmatpush.bf16.msra.mxu1 %v1139_v18  ;;  %382 = vmatpush.bf16.msra.mxu3 %v1157_v55  ;;  %v1166_v18 = vld [vmem:[#allocation2 + $0x130] sm:$0xff] }
  0x19   :  { %296 = vmatpush.bf16.msra.mxu2 %v1148_v33  ;;  %v1163_v33 = vld [vmem:[#allocation2 + $0x118] sm:$0xff] }
  0x1a   :  { %108 = vmatpush.bf16.msra.mxu0 %v1130_v6 }
  0x1c   :  { %203 = vmatpush.bf16.msra.mxu1 %v1138_v19  ;;  %383 = vmatpush.bf16.msra.mxu3 %v1156_v60  ;;  %v1171_v60 = vld [vmem:[#allocation2 + $0x158] sm:$0xff] }
  0x1d   :  { %297 = vmatpush.bf16.msra.mxu2 %v1147_v46 }
  0x1e   :  { %109 = vmatpush.bf16.msra.mxu0 %v1129_v8 }
  0x20   :  { %204 = vmatpush.bf16.msra.mxu1 %v1137_v20  ;;  %384 = vmatpush.bf16.msra.mxu3 %v1155_v0  ;;  %v1165_v20 = vld [vmem:[#allocation2 + $0x128] sm:$0xff] }
  0x21   :  { %298 = vmatpush.bf16.msra.mxu2 %v1146_v47  ;;  %v1172_v47 = vld [vmem:[#allocation2 + $0x160] sm:$0xff] }
  0x22   :  { %110 = vmatpush.bf16.msra.mxu0 %v1128_v10  ;;  %v1154_v10 = vld [vmem:[#allocation2 + $0xd0] sm:$0xff] }
  0x24   :  { %205 = vmatpush.bf16.msra.mxu1 %v1136_v21  ;;  %385 = vmatpush.bf16.msra.mxu3 %v1154_v10  ;;  %v244_v21 = vperm.slane %v1289_v22, 2 }
  0x25   :  { %111 = vmatmul.bf16.vlgmr.msra.gmra.mxu0 %v36_v14  ;;  %299 = vmatpush.bf16.msra.mxu2 %v1145_v48  ;;  %v1152_v14 = vld [vmem:[#allocation2 + $0xc0] sm:$0xff] }
  0x28   :  { %386 = vmatpush.bf16.msra.mxu3 %v1153_v13 }
  0x29   :  { %300 = vmatpush.bf16.msra.mxu2 %v1144_v49 }
  0x2c   :  { %387 = vmatpush.bf16.msra.mxu3 %v1152_v14 }
  0x35   :  { %116 = vmatmul.bf16.gmra.mxu0 %v37_v17  ;;  %v1167_v17 = vld [vmem:[#allocation2 + $0x138] sm:$0xff] }
  0x36   :  { %475 = vmatpush.bf16.msrb.mxu0 %v1167_v17 }
  0x3a   :  { %476 = vmatpush.bf16.msrb.mxu0 %v1166_v18 }
  0x3e   :  { %477 = vmatpush.bf16.msrb.mxu0 %v1165_v20 }
  0xa2   :  { %v112_v23 = vpop.f32.mrf.mxu0 }
  0xa3   :  { %v113_v27 = vadd.f32 %v112_v23, %v54_v24  ;;  %v1164_v23 = vld [vmem:[#allocation2 + $0x120] sm:$0xff] }
  0xa4   :  { %478 = vmatpush.bf16.msrb.mxu0 %v1164_v23 }
  0xa5   :  { %v122_v30 = vmul.f32 0.1, %v113_v27 }
  0xa7   :  { %v126_v34 = vmax.f32 %v113_v27, %v122_v30 }
  0xa8   :  { %479 = vmatpush.bf16.msrb.mxu0 %v1163_v33 }
  0xaa   :  { %v114_v29 = vpop.f32.mrf.mxu0 }
  0xab   :  { %v115_v31 = vadd.f32 %v114_v29, %v54_v24 }
  0xad   :  { %v123_v32 = vmul.f32 0.1, %v115_v31 }
  0xaf   :  { %v127_v35 = vmax.f32 %v115_v31, %v123_v32 }
  0xb1   :  { %v130_v36 = vpack.c.bf16 %v127_v35, %v126_v34  ;;  %v1162_v34 = vld [vmem:[#allocation2 + $0x110] sm:$0xff]  ;;  %v1161_v35 = vld [vmem:[#allocation2 + $0x108] sm:$0xff] }
  0xb2   :  { %v117_v37 = vpop.f32.mrf.mxu0  ;;  %480 = vmatpush.bf16.msrb.mxu0 %v1162_v34 }
  0xb3   :  { %206 = vmatmul.bf16.vlgmr.msra.gmra.mxu1 %v130_v36  ;;  %v118_v38 = vadd.f32 %v117_v37, %v54_v24  ;;  %v1160_v36 = vld [vmem:[#allocation2 + $0x100] sm:$0xff] }
  0xb5   :  { %v124_v40 = vmul.f32 0.1, %v118_v38 }
  0xb6   :  { %481 = vmatpush.bf16.msrb.mxu0 %v1161_v35 }
  0xb7   :  { %v128_v43 = vmax.f32 %v118_v38, %v124_v40  ;;  %v331_v38 = vperm.slane %v1289_v22, 3  ;;  %v1174_v40 = vld [vmem:[#allocation2 + $0x170] sm:$0xff] }
  0xba   :  { %v119_v39 = vpop.f32.mrf.mxu0  ;;  %482 = vmatpush.bf16.msrb.mxu0 %v1160_v36 }
  0xbb   :  { %v120_v41 = vadd.f32 %v119_v39, %v54_v24  ;;  %v1175_v39 = vld [vmem:[#allocation2 + $0x178] sm:$0xff] }
  0xbc   :  { %570 = vmatpush.bf16.msrb.mxu1 %v1175_v39  ;;  %v521_v39 = vperm.slane %v1289_v22, 5 }
  0xbd   :  { %v125_v42 = vmul.f32 0.1, %v120_v41 }
  0xbf   :  { %v129_v44 = vmax.f32 %v120_v41, %v125_v42  ;;  %v1173_v42 = vld [vmem:[#allocation2 + $0x168] sm:$0xff] }
  0xc0   :  { %571 = vmatpush.bf16.msrb.mxu1 %v1174_v40 }
  0xc1   :  { %v131_v45 = vpack.c.bf16 %v129_v44, %v128_v43 }
  0xc3   :  { %211 = vmatmul.bf16.gmra.mxu1 %v131_v45 }
  0xc4   :  { %572 = vmatpush.bf16.msrb.mxu1 %v1173_v42 }
  0xc8   :  { %573 = vmatpush.bf16.msrb.mxu1 %v1172_v47 }
  0xcc   :  { %574 = vmatpush.bf16.msrb.mxu1 %v1171_v60 }
 0x130   :  { %v207_v50 = vpop.f32.mrf.mxu1 }
 0x131   :  { %v208_v54 = vadd.f32 %v207_v50, %v149_v51 }
 0x133   :  { %v217_v57 = vmul.f32 0.1, %v208_v54 }
 0x135   :  { %v221_v61 = vmax.f32 %v208_v54, %v217_v57 }
 0x138   :  { %v209_v56 = vpop.f32.mrf.mxu1 }
 0x139   :  { %v210_v58 = vadd.f32 %v209_v56, %v149_v51 }
 0x13b   :  { %v218_v59 = vmul.f32 0.1, %v210_v58 }
 0x13d   :  { %v222_v62 = vmax.f32 %v210_v58, %v218_v59 }
 0x13f   :  { %v225_v63 = vpack.c.bf16 %v222_v62, %v221_v61  ;;  %v1170_v61 = vld [vmem:[#allocation2 + $0x150] sm:$0xff]  ;;  %v1169_v62 = vld [vmem:[#allocation2 + $0x148] sm:$0xff] }
 0x140   :  { %v212_v1 = vpop.f32.mrf.mxu1  ;;  %575 = vmatpush.bf16.msrb.mxu1 %v1170_v61 }
 0x141   :  { %301 = vmatmul.bf16.vlgmr.msra.gmra.mxu2 %v225_v63  ;;  %v213_v2 = vadd.f32 %v212_v1, %v149_v51  ;;  %v1168_v63 = vld [vmem:[#allocation2 + $0x140] sm:$0xff]  ;;  %v426_v1 = vperm.slane %v1289_v22, 4 }
 0x143   :  { %v219_v4 = vmul.f32 0.1, %v213_v2 }
 0x144   :  { %576 = vmatpush.bf16.msrb.mxu1 %v1169_v62 }
 0x145   :  { %v223_v7 = vmax.f32 %v213_v2, %v219_v4  ;;  %v1311_v2 = vld [vmem:[%s1475_s0 + $0x20] sm:$0xff]  ;;  %v1321_v4 = vld [vmem:[%s1475_s0 + $0x30] sm:$0xff] }
 0x148   :  { %v214_v3 = vpop.f32.mrf.mxu1  ;;  %577 = vmatpush.bf16.msrb.mxu1 %v1168_v63 }
 0x149   :  { %v215_v5 = vadd.f32 %v214_v3, %v149_v51  ;;  %v1316_v3 = vld [vmem:[%s1475_s0 + $0x28] sm:$0xff] }
 0x14b   :  { %v220_v6 = vmul.f32 0.1, %v215_v5 }
 0x14d   :  { %v224_v8 = vmax.f32 %v215_v5, %v220_v6  ;;  %v1326_v5 = vld [vmem:[%s1475_s0 + $0x38] sm:$0xff]  ;;  %v665_v6 = vmul.f32 %v1311_v2, %v1311_v2 }
 0x14f   :  { %v226_v9 = vpack.c.bf16 %v224_v8, %v223_v7  ;;  %v666_v7 = vmul.f32 %v1316_v3, %v1316_v3  ;;  %v667_v8 = vmul.f32 %v1321_v4, %v1321_v4 }
 0x151   :  { %306 = vmatmul.bf16.gmra.mxu2 %v226_v9  ;;  %v668_v9 = vmul.f32 %v1326_v5, %v1326_v5  ;;  %v669_v10 = vadd.f32 %v666_v7, %v665_v6 }
 0x153   :  { %v670_v14 = vadd.f32 %v669_v10, %v667_v8 }
 0x155   :  { %v671_v18 = vadd.f32 %v670_v14, %v668_v9 }
 0x157   :  { %672 = vadd.xlane.f32.xlu0 %v671_v18 }
 0x1c4   :  { %v302_v19 = vpop.f32.mrf.mxu2 }
 0x1c5   :  { %v1294_v25 = vadd.f32 %v302_v19, %v244_v21 }
 0x1cc   :  { %v304_v24 = vpop.f32.mrf.mxu2 }
 0x1cd   :  { %v1296_v26 = vadd.f32 %v304_v24, %v244_v21 }
 0x1cf   :  { %v312_v27 = vpack.c.bf16 %v1296_v26, %v1294_v25 }
 0x1d1   :  { %388 = vmatmul.bf16.vlgmr.msra.gmra.mxu3 %v312_v27 }
 0x1d4   :  { %v307_v28 = vpop.f32.mrf.mxu2 }
 0x1d5   :  { %v1300_v30 = vadd.f32 %v307_v28, %v244_v21 }
 0x1dc   :  { %v309_v29 = vpop.f32.mrf.mxu2 }
 0x1dd   :  { %v1302_v31 = vadd.f32 %v309_v29, %v244_v21 }
 0x1df   :  { %v313_v32 = vpack.c.bf16 %v1302_v31, %v1300_v30 }
 0x1e1   :  { %393 = vmatmul.bf16.gmra.mxu3 %v313_v32 }
 0x254   :  { %v389_v37 = vpop.f32.mrf.mxu3 }
 0x255   :  { %v390_v41 = vadd.f32 %v389_v37, %v331_v38 }
 0x257   :  { %v399_v44 = vmul.f32 0.1, %v390_v41 }
 0x259   :  { %v403_v48 = vmax.f32 %v390_v41, %v399_v44 }
 0x25c   :  { %v391_v43 = vpop.f32.mrf.mxu3 }
 0x25d   :  { %v392_v45 = vadd.f32 %v391_v43, %v331_v38 }
 0x25f   :  { %v400_v46 = vmul.f32 0.1, %v392_v45 }
 0x261   :  { %v404_v49 = vmax.f32 %v392_v45, %v400_v46  ;;  %v673_v46 = vpop.xlane.xlu0 %672 }
 0x262   :  { %v674_v47 = vrot.slane %v673_v46, 4 }
 0x263   :  { %v407_v50 = vpack.c.bf16 %v404_v49, %v403_v48 }
 0x264   :  { %v394_v51 = vpop.f32.mrf.mxu3  ;;  %v675_v49 = vadd.f32 %v674_v47, %v673_v46 }
 0x265   :  { %483 = vmatmul.bf16.vlgmr.msrb.gmra.mxu0 %v407_v50  ;;  %v395_v52 = vadd.f32 %v394_v51, %v331_v38 }
 0x267   :  { %v401_v54 = vmul.f32 0.1, %v395_v52 }
 0x269   :  { %v405_v57 = vmax.f32 %v395_v52, %v401_v54  ;;  %v676_v52 = vrot.slane %v675_v49, 2 }
 0x26b   :  { %v677_v54 = vadd.f32 %v676_v52, %v675_v49 }
 0x26c   :  { %v396_v53 = vpop.f32.mrf.mxu3 }
 0x26d   :  { %v397_v55 = vadd.f32 %v396_v53, %v331_v38 }
 0x26f   :  { %v402_v56 = vmul.f32 0.1, %v397_v55 }
 0x271   :  { %v406_v58 = vmax.f32 %v397_v55, %v402_v56 }
 0x273   :  { %v408_v59 = vpack.c.bf16 %v406_v58, %v405_v57  ;;  %v678_v57 = vrot.slane %v677_v54, 1 }
 0x275   :  { %488 = vmatmul.bf16.gmra.mxu0 %v408_v59  ;;  %v679_v60 = vadd.f32 %v678_v57, %v677_v54 }
 0x277   :  { %1176 = vpush %v679_v60 }
 0x2a8   :  { %s1177_s0 = spop %1176 }
 0x2e2   :  { %v484_v0 = vpop.f32.mrf.mxu0 }
 0x2e3   :  { %v485_v13 = vadd.f32 %v484_v0, %v426_v1 }
 0x2e5   :  { %v494_v19 = vmul.f32 0.1, %v485_v13 }
 0x2e7   :  { %v498_v23 = vmax.f32 %v485_v13, %v494_v19 }
 0x2ea   :  { %v486_v17 = vpop.f32.mrf.mxu0 }
 0x2eb   :  { %v487_v20 = vadd.f32 %v486_v17, %v426_v1 }
 0x2ed   :  { %v495_v21 = vmul.f32 0.1, %v487_v20 }
 0x2ef   :  { %v499_v24 = vmax.f32 %v487_v20, %v495_v21  ;;  %v1242_v20 = vmov 1.0  }
 0x2f0   :  { %782 = vmatpush.msrb.mxu3 %v1242_v20 }
 0x2f1   :  { %v502_v27 = vpack.c.bf16 %v499_v24, %v498_v23 }
 0x2f2   :  { %v489_v28 = vpop.f32.mrf.mxu0  ;;  %783 = vmatpush.msrb.mxu3 %v1242_v20 }
 0x2f3   :  { %578 = vmatmul.bf16.vlgmr.msrb.gmra.mxu1 %v502_v27  ;;  %v490_v29 = vadd.f32 %v489_v28, %v426_v1 }
 0x2f4   :  { %784 = vmatpush.msrb.mxu3 %v1242_v20 }
 0x2f5   :  { %v496_v33 = vmul.f32 0.1, %v490_v29 }
 0x2f6   :  { %785 = vmatpush.msrb.mxu3 %v1242_v20 }
 0x2f7   :  { %v500_v36 = vmax.f32 %v490_v29, %v496_v33 }
 0x2fa   :  { %v491_v32 = vpop.f32.mrf.mxu0 }
 0x2fb   :  { %v492_v34 = vadd.f32 %v491_v32, %v426_v1 }
 0x2fd   :  { %v497_v35 = vmul.f32 0.1, %v492_v34 }
 0x2ff   :  { %v501_v37 = vmax.f32 %v492_v34, %v497_v35 }
 0x301   :  { %v503_v38 = vpack.c.bf16 %v501_v37, %v500_v36 }
 0x303   :  { %583 = vmatmul.bf16.gmra.mxu1 %v503_v38 }
 0x370   :  { %v579_v40 = vpop.f32.mrf.mxu1 }
 0x371   :  { %v580_v41 = vadd.f32 %v579_v40, %v521_v39 }
 0x373   :  { %1187 = vtanh.f32 %v580_v41 }
 0x378   :  { %v581_v42 = vpop.f32.mrf.mxu1 }
 0x379   :  { %v1337_v43 = vpop.eup %1187  ;;  %v582_v44 = vadd.f32 %v581_v42, %v521_v39 }
 0x37a   :  { %v605_v45 = vmul.f32 %v1337_v43, %v1337_v43  ;;  %v873_v50 = vsub.f32 %v1337_v43, %v1265_v11  ;;  %v593_v17 = vmul.f32 %v1337_v43, %v1311_v2 }
 0x37b   :  { %1189 = vtanh.f32 %v582_v44 }
 0x37c   :  { %609 = vadd.xlane.f32.xlu2 %v605_v45  ;;  %v877_v55 = vmul.f32 %v873_v50, %v873_v50  ;;  %v710_v50 = vlaneseq }
 0x37e   :  { %v1382_v54 = vand.u32 127, %v710_v50 }
 0x380   :  { %v584_v48 = vpop.f32.mrf.mxu1 }
 0x381   :  { %v1343_v22 = vpop.eup %1189  ;;  %v585_v51 = vadd.f32 %v584_v48, %v521_v39 }
 0x382   :  { %v874_v53 = vsub.f32 %v1343_v22, %v1270_v12  ;;  %v606_v7 = vmul.f32 %v1343_v22, %v1343_v22  ;;  %v594_v14 = vmul.f32 %v1343_v22, %v1316_v3 }
 0x383   :  { %1191 = vtanh.f32 %v585_v51 }
 0x384   :  { %v878_v56 = vmul.f32 %v874_v53, %v874_v53  ;;  %v1380_v53 = vshrl.u32 %v710_v50, 7 }
 0x386   :  { %v881_v58 = vadd.f32 %v878_v56, %v877_v55  ;;  %vm717_vm4 = vcmp.eq.s32.totalorder %v1380_v53, %v1382_v54  ;;  %vm807_vm15 = vcmp.lt.s32.totalorder %v1382_v54, %v1380_v53 }
 0x388   :  { %v586_v59 = vpop.f32.mrf.mxu1 }
 0x389   :  { %v1347_v61 = vpop.eup %1191  ;;  %v587_v62 = vadd.f32 %v586_v59, %v521_v39 }
 0x38a   :  { %v607_v11 = vmul.f32 %v1347_v61, %v1347_v61  ;;  %v875_v63 = vsub.f32 %v1347_v61, %v1277_v15  ;;  %v595_v13 = vmul.f32 %v1347_v61, %v1321_v4 }
 0x38b   :  { %1193 = vtanh.f32 %v587_v62 }
 0x38c   :  { %613 = vadd.xlane.f32.xlu1 %v607_v11  ;;  %v879_v12 = vmul.f32 %v875_v63, %v875_v63 }
 0x38e   :  { %v882_v0 = vadd.f32 %v881_v58, %v879_v12 }
 0x391   :  { %v1353_v1 = vpop.eup %1193 }
 0x392   :  { %v608_v6 = vmul.f32 %v1353_v1, %v1353_v1  ;;  %v596_v8 = vmul.f32 %v1353_v1, %v1326_v5  ;;  %v876_v9 = vsub.f32 %v1353_v1, %v1282_v16  ;;  %v681_v16 = vstv %s1177_s0 }
 0x393   :  { %1195 = vrsqrt.f32 %v681_v16  ;;  %vm689_vm0 = vcmp.eq.f32.partialorder %v681_v16, inf  ;;  %v692_v33 = vand.u32 2147483648, %v681_v16  ;;  %vm691_vm1 = vcmp.eq.f32.partialorder %v681_v16, 0.0 }
 0x394   :  { %615 = vadd.xlane.f32.xlu0 %v608_v6  ;;  %611 = vadd.xlane.f32.xlu1 %v606_v7  ;;  %v880_v15 = vmul.f32 %v876_v9, %v876_v9 }
 0x395   :  { %603 = vadd.xlane.f32.xlu2 %v596_v8 }
 0x396   :  { %v1363_v10 = vadd.f32 %v882_v0, %v880_v15 }
 0x399   :  { %v1196_v5 = vpop.eup %1195 }
 0x39a   :  { %v683_v18 = vmul.f32 %v1196_v5, %v681_v16 }
 0x39c   :  { %601 = vadd.xlane.f32.xlu0 %v595_v13  ;;  %599 = vadd.xlane.f32.xlu1 %v594_v14  ;;  %v684_v19 = vmul.f32 %v1196_v5, %v683_v18 }
 0x39d   :  { %597 = vadd.xlane.f32.xlu2 %v593_v17 }
 0x39e   :  { %v685_v21 = vmul.f32 0.5, %v684_v19 }
 0x3a0   :  { %v686_v2 = vsub.f32 1.5, %v685_v21 }
 0x3a2   :  { %v687_v23 = vmul.f32 %v1196_v5, %v686_v2 }
 0x3a4   :  { %v688_v28 = vmul.f32 %v687_v23, %v681_v16 }
 0x3a6   :  { %v690_v34 = vsel %vm689_vm0, %v681_v16, %v688_v28 }
 0x3a7   :  { %v1375_v38 = vsel %vm691_vm1, %v692_v33, %v690_v34 }
 0x3ef   :  { %v610_v4 = vpop.xlane.xlu2 %609 }
 0x3f0   :  { %1197 = vrsqrt.f32 %v610_v4  ;;  %vm624_vm2 = vcmp.eq.f32.partialorder %v610_v4, inf  ;;  %v627_v39 = vand.u32 2147483648, %v610_v4  ;;  %vm626_vm3 = vcmp.eq.f32.partialorder %v610_v4, 0.0 }
 0x3f6   :  { %v1198_v3 = vpop.eup %1197 }
 0x3f7   :  { %v618_v24 = vmul.f32 %v1198_v3, %v610_v4 }
 0x3f9   :  { %v619_v27 = vmul.f32 %v1198_v3, %v618_v24 }
 0x3fb   :  { %v620_v29 = vmul.f32 0.5, %v619_v27 }
 0x3fd   :  { %v621_v32 = vsub.f32 1.5, %v620_v29 }
 0x3ff   :  { %v622_v35 = vmul.f32 %v1198_v3, %v621_v32  ;;  %v614_v36 = vpop.xlane.xlu1 %613 }
 0x400   :  { %1199 = vrsqrt.f32 %v614_v36  ;;  %vm648_vm6 = vcmp.eq.f32.partialorder %v614_v36, inf  ;;  %v651_v9 = vand.u32 2147483648, %v614_v36  ;;  %vm650_vm7 = vcmp.eq.f32.partialorder %v614_v36, 0.0 }
 0x401   :  { %v623_v37 = vmul.f32 %v622_v35, %v610_v4 }
 0x403   :  { %v625_v40 = vsel %vm624_vm2, %v610_v4, %v623_v37  ;;  %v712_v37 = vadd.s32 8, %v1380_v53 }
 0x404   :  { %v628_v41 = vsel %vm626_vm3, %v627_v39, %v625_v40 }
 0x405   :  { %v694_v42 = vmul.f32 %v1375_v38, %v628_v41  ;;  %v713_v41 = vadd.s32 16, %v1380_v53  ;;  %vm718_vm13 = vcmp.eq.s32.totalorder %v712_v37, %v1382_v54 }
 0x406   :  { %v1200_v44 = vpop.eup %1199 }
 0x407   :  { %v642_v45 = vmul.f32 %v1200_v44, %v614_v36  ;;  %v616_v46 = vpop.xlane.xlu0 %615  ;;  %v612_v47 = vpop.xlane.xlu1 %611  ;;  %v698_v48 = vadd.f32 1e-05, %v694_v42  ;;  %vm719_vm14 = vcmp.eq.s32.totalorder %v713_v41, %v1382_v54 }
 0x408   :  { %1201 = vrsqrt.f32 %v616_v46  ;;  %v1378_v49 = vpop.xlane.xlu2 %603  ;;  %vm660_vm8 = vcmp.eq.f32.partialorder %v616_v46, inf  ;;  %v663_v2 = vand.u32 2147483648, %v616_v46  ;;  %vm662_vm9 = vcmp.eq.f32.partialorder %v616_v46, 0.0 }
 0x409   :  { %v643_v51 = vmul.f32 %v1200_v44, %v642_v45  ;;  %1203 = vrsqrt.f32 %v612_v47  ;;  %vm636_vm10 = vcmp.eq.f32.partialorder %v612_v47, inf  ;;  %v639_v23 = vand.u32 2147483648, %v612_v47 }
 0x40a   :  { %1205 = vrcp.f32 %v698_v48  ;;  %vm638_vm11 = vcmp.eq.f32.partialorder %v612_v47, 0.0 }
 0x40b   :  { %v644_v52 = vmul.f32 0.5, %v643_v51 }
 0x40d   :  { %v645_v55 = vsub.f32 1.5, %v644_v52 }
 0x40e   :  { %v1202_v56 = vpop.eup %1201 }
 0x40f   :  { %v1204_v57 = vpop.eup %1203  ;;  %v646_v58 = vmul.f32 %v1200_v44, %v645_v55  ;;  %v654_v59 = vmul.f32 %v1202_v56, %v616_v46  ;;  %v600_v44 = vpop.xlane.xlu1 %599 }
 0x410   :  { %v1206_v60 = vpop.eup %1205  ;;  %v630_v62 = vmul.f32 %v1204_v57, %v612_v47  ;;  %v598_v11 = vpop.xlane.xlu2 %597 }
 0x411   :  { %v647_v63 = vmul.f32 %v646_v58, %v614_v36  ;;  %v655_v12 = vmul.f32 %v1202_v56, %v654_v59  ;;  %v1386_v0 = vmul.f32 %v1206_v60, %v598_v11  ;;  %v602_v45 = vpop.xlane.xlu0 %601 }
 0x412   :  { %v631_v6 = vmul.f32 %v1204_v57, %v630_v62 }
 0x413   :  { %v656_v7 = vmul.f32 0.5, %v655_v12  ;;  %v649_v8 = vsel %vm648_vm6, %v614_v36, %v647_v63  ;;  %v721_v15 = vsel %vm717_vm4, %v1386_v0, 0.0  ;;  %v1397_v36 = vadd.s32 24, %v1380_v53 }
 0x414   :  { %v632_v13 = vmul.f32 0.5, %v631_v6  ;;  %1116 = vmatmul.msk.f32.vlgmr.msrb.gmra.mxu3 %vm725_vm5, %v721_v15  ;;  %v652_v17 = vsel %vm650_vm7, %v651_v9, %v649_v8 }
 0x415   :  { %v657_v14 = vsub.f32 1.5, %v656_v7  ;;  %v696_v19 = vmul.f32 %v1375_v38, %v652_v17  ;;  %vm720_vm12 = vcmp.eq.s32.totalorder %v1397_v36, %v1382_v54 }
 0x416   :  { %v633_v16 = vsub.f32 1.5, %v632_v13 }
 0x417   :  { %v658_v5 = vmul.f32 %v1202_v56, %v657_v14  ;;  %v700_v27 = vadd.f32 1e-05, %v696_v19  ;;  %v1243_v56 = vmov 0.0  }
 0x418   :  { %v634_v18 = vmul.f32 %v1204_v57, %v633_v16 }
 0x419   :  { %v659_v21 = vmul.f32 %v658_v5, %v616_v46  ;;  %1207 = vrcp.f32 %v700_v27 }
 0x41a   :  { %v635_v4 = vmul.f32 %v634_v18, %v612_v47 }
 0x41b   :  { %v661_v3 = vsel %vm660_vm8, %v616_v46, %v659_v21 }
 0x41c   :  { %v664_v24 = vsel %vm662_vm9, %v663_v2, %v661_v3  ;;  %v637_v28 = vsel %vm636_vm10, %v612_v47, %v635_v4  ;;  %vm809_vm10 = vcmp.lt.s32.totalorder %v1382_v54, %v713_v41 }
 0x41d   :  { %v697_v29 = vmul.f32 %v1375_v38, %v664_v24  ;;  %v640_v32 = vsel %vm638_vm11, %v639_v23, %v637_v28 }
 0x41e   :  { %v695_v33 = vmul.f32 %v1375_v38, %v640_v32 }
 0x41f   :  { %v701_v34 = vadd.f32 1e-05, %v697_v29  ;;  %v1208_v39 = vpop.eup %1207 }
 0x420   :  { %v699_v35 = vadd.f32 1e-05, %v695_v33  ;;  %v1409_v47 = vmul.f32 %v1208_v39, %v602_v45 }
 0x421   :  { %1209 = vrcp.f32 %v701_v34 }
 0x422   :  { %1211 = vrcp.f32 %v699_v35 }
 0x427   :  { %v1210_v40 = vpop.eup %1209 }
 0x428   :  { %v1212_v42 = vpop.eup %1211  ;;  %v1404_v38 = vmul.f32 %v1210_v40, %v1378_v49  ;;  %v723_v49 = vsel %vm719_vm14, %v1409_v47, 0.0 }
 0x429   :  { %v1407_v46 = vmul.f32 %v1212_v42, %v600_v44 }
 0x42a   :  { %1108 = vmatpush.msk.msrb.mxu2 %vm720_vm12, %v1404_v38  ;;  %v724_v50 = vsel %vm720_vm12, %v1404_v38, 0.0 }
 0x42b   :  { %v722_v48 = vsel %vm718_vm13, %v1407_v46, 0.0 }
 0x42c   :  { %1117 = vmatmul.msk.f32.gmra.mxu3 %vm725_vm5, %v722_v48  ;;  %1109 = vmatpush.msk.msrb.mxu2 %vm719_vm14, %v1409_v47 }
 0x42e   :  { %1110 = vmatpush.msk.msrb.mxu2 %vm718_vm13, %v1407_v46 }
 0x430   :  { %1111 = vmatpush.msk.msrb.mxu2 %vm717_vm4, %v1386_v0  ;;  %vm808_vm4 = vcmp.lt.s32.totalorder %v1382_v54, %v712_v37 }
 0x431   :  { %1112 = vmatmul.msk.f32.vlgmr.msrb.gmra.mxu2 %vm725_vm5, %v1242_v20 }
 0x434   :  { %1118 = vmatmul.msk.f32.gmra.mxu3 %vm725_vm5, %v723_v49 }
 0x439   :  { %1113 = vmatmul.msk.f32.gmra.mxu2 %vm725_vm5, %v1242_v20 }
 0x43c   :  { %1119 = vmatmul.msk.f32.gmra.mxu3 %vm725_vm5, %v724_v50 }
 0x441   :  { %1114 = vmatmul.msk.f32.gmra.mxu2 %vm725_vm5, %v1242_v20 }
 0x449   :  { %1115 = vmatmul.msk.f32.gmra.mxu2 %vm725_vm5, %v1242_v20 }
 0x497   :  { %v787_v51 = vpop.f32.mrf.mxu3 }
 0x4af   :  { %v790_v55 = vpop.f32.mrf.mxu3 }
 0x4b4   :  { %v746_v52 = vpop.f32.mrf.mxu2 }
 0x4b5   :  { %vm799_vm0 = vcmp.gt.f32.partialorder %v746_v52, %v787_v51  ;;  %vm803_vm1 = vcmp.eq.f32.partialorder %v746_v52, %v787_v51  ;;  %v897_v51 = vadd.f32 %v1337_v43, %v1294_v25  ;;  %v898_v52 = vadd.f32 %v1343_v22, %v1296_v26 }
 0x4b6   :  { %vm811_vm2 = vmand %vm803_vm1, %vm807_vm15  ;;  %vm810_vm15 = vcmp.lt.s32.totalorder %v1382_v54, %v1397_v36 }
 0x4b7   :  { %vm815_vm3 = vmor %vm799_vm0, %vm811_vm2  ;;  %v793_v60 = vpop.f32.mrf.mxu3 }
 0x4b8   :  { %v1120_v57 = vsel %vm815_vm3, 1.0, %v1243_v56 }
 0x4b9   :  { %v827_v58 = vsel %vm725_vm5, %v1120_v57, 0.0 }
 0x4ba   :  { %828 = vadd.xlane.f32.xlu0 %v827_v58 }
 0x4bc   :  { %v749_v59 = vpop.f32.mrf.mxu2 }
 0x4bd   :  { %vm800_vm6 = vcmp.gt.f32.partialorder %v749_v59, %v790_v55  ;;  %vm804_vm7 = vcmp.eq.f32.partialorder %v749_v59, %v790_v55  ;;  %v899_v55 = vadd.f32 %v1347_v61, %v1300_v30 }
 0x4be   :  { %vm812_vm8 = vmand %vm804_vm7, %vm808_vm4 }
 0x4bf   :  { %vm816_vm9 = vmor %vm800_vm6, %vm812_vm8  ;;  %v796_v12 = vpop.f32.mrf.mxu3  ;;  %vm855_vm8 = vcmask 7168  }
 0x4c0   :  { %v1121_v20 = vsel %vm816_vm9, 1.0, %v1243_v56  ;;  %vm901_vm9 = vcmp.eq.s32.totalorder %v1382_v54, 80 }
 0x4c1   :  { %v830_v53 = vsel %vm725_vm5, %v1121_v20, 0.0 }
 0x4c2   :  { %831 = vadd.xlane.f32.xlu1 %v830_v53 }
 0x4c4   :  { %v752_v62 = vpop.f32.mrf.mxu2 }
 0x4c5   :  { %vm801_vm11 = vcmp.gt.f32.partialorder %v752_v62, %v793_v60  ;;  %vm805_vm12 = vcmp.eq.f32.partialorder %v752_v62, %v793_v60 }
 0x4c6   :  { %vm813_vm13 = vmand %vm805_vm12, %vm809_vm10 }
 0x4c7   :  { %vm817_vm14 = vmor %vm801_vm11, %vm813_vm13 }
 0x4c8   :  { %v1122_v11 = vsel %vm817_vm14, 1.0, %v1243_v56 }
 0x4c9   :  { %v833_v63 = vsel %vm725_vm5, %v1122_v11, 0.0 }
 0x4ca   :  { %834 = vadd.xlane.f32.xlu2 %v833_v63 }
 0x4cc   :  { %v755_v6 = vpop.f32.mrf.mxu2 }
 0x4cd   :  { %vm802_vm0 = vcmp.gt.f32.partialorder %v755_v6, %v796_v12  ;;  %vm806_vm1 = vcmp.eq.f32.partialorder %v755_v6, %v796_v12 }
 0x4ce   :  { %vm814_vm2 = vmand %vm806_vm1, %vm810_vm15 }
 0x4cf   :  { %vm818_vm3 = vmor %vm802_vm0, %vm814_vm2 }
 0x4d0   :  { %v1123_v7 = vsel %vm818_vm3, 1.0, %v1243_v56 }
 0x4d1   :  { %v836_v8 = vsel %vm725_vm5, %v1123_v7, 0.0 }
 0x4d2   :  { %884 = vadd.xlane.f32.xlu2 %v1363_v10  ;;  %837 = vadd.xlane.f32.xlu0 %v836_v8 }
 0x52d   :  { %v829_v15 = vpop.xlane.xlu0 %828 }
 0x52e   :  { %vm839_vm6 = vcmp.lt.f32.partialorder %v829_v15, 20.0 }
 0x52f   :  { %v1124_v17 = vsel %vm839_vm6, 1.0, %v1243_v56 }
 0x530   :  { %v851_v18 = vmul.f32 %v1124_v17, %v1386_v0 }
 0x532   :  { %v856_v10 = vsel %vm855_vm8, %v851_v18, 0.0 }
 0x535   :  { %v832_v9 = vpop.xlane.xlu1 %831 }
 0x536   :  { %vm840_vm4 = vcmp.lt.f32.partialorder %v832_v9, 20.0 }
 0x537   :  { %v1125_v13 = vsel %vm840_vm4, 1.0, %v1243_v56 }
 0x538   :  { %v852_v5 = vmul.f32 %v1125_v13, %v1407_v46 }
 0x53a   :  { %v857_v21 = vsel %vm855_vm8, %v852_v5, 0.0 }
 0x53b   :  { %v858_v23 = vadd.f32 %v857_v21, %v856_v10 }
 0x53d   :  { %v835_v14 = vpop.xlane.xlu2 %834 }
 0x53e   :  { %vm841_vm7 = vcmp.lt.f32.partialorder %v835_v14, 20.0 }
 0x53f   :  { %v1126_v16 = vsel %vm841_vm7, 1.0, %v1243_v56 }
 0x540   :  { %v853_v19 = vmul.f32 %v1126_v16, %v1409_v47 }
 0x542   :  { %v859_v2 = vsel %vm855_vm8, %v853_v19, 0.0 }
 0x543   :  { %v860_v27 = vadd.f32 %v859_v2, %v858_v23 }
 0x545   :  { %v838_v4 = vpop.xlane.xlu0 %837  ;;  %v885_v32 = vpop.xlane.xlu2 %884 }
 0x546   :  { %vm842_vm5 = vcmp.lt.f32.partialorder %v838_v4, 20.0  ;;  %v886_v33 = vrot.slane %v885_v32, 4 }
 0x547   :  { %v1127_v3 = vsel %vm842_vm5, 1.0, %v1243_v56  ;;  %v900_v56 = vadd.f32 %v1353_v1, %v1302_v31 }
 0x548   :  { %v854_v24 = vmul.f32 %v1127_v3, %v1404_v38  ;;  %v887_v34 = vadd.f32 %v886_v33, %v885_v32 }
 0x54a   :  { %v861_v28 = vsel %vm855_vm8, %v854_v24, 0.0  ;;  %v888_v0 = vrot.slane %v887_v34, 2 }
 0x54b   :  { %v862_v29 = vadd.f32 %v861_v28, %v860_v27 }
 0x54c   :  { %v889_v39 = vadd.f32 %v888_v0, %v887_v34 }
 0x54d   :  { %863 = vadd.xlane.f32.xlu1 %v862_v29 }
 0x54e   :  { %v890_v42 = vrot.slane %v889_v39, 1 }
 0x550   :  { %v891_v46 = vadd.f32 %v890_v42, %v889_v39 }
 0x5c0   :  { %v864_v35 = vpop.xlane.xlu1 %863 }
 0x5c1   :  { %v865_v36 = vrot.slane %v864_v35, 4 }
 0x5c3   :  { %v866_v37 = vadd.f32 %v865_v36, %v864_v35 }
 0x5c5   :  { %v867_v40 = vrot.slane %v866_v37, 2 }
 0x5c7   :  { %v868_v41 = vadd.f32 %v867_v40, %v866_v37 }
 0x5c9   :  { %v869_v44 = vrot.slane %v868_v41, 1 }
 0x5cb   :  { %v870_v45 = vadd.f32 %v869_v44, %v868_v41 }
 0x5cd   :  { %1178 = vpush %v870_v45 }
 0x5ce   :  { %1180 = vpush %v891_v46 }
 0x5fe   :  { %s1179_s5 = spop %1178 }
 0x5ff   :  { %v872_v38 = vstv %s1179_s5  ;;  %s1181_s6 = spop %1180 }
 0x600   :  { %v895_v47 = vmul.f32 0.1, %v872_v38  ;;  %v893_v48 = vstv %s1181_s6 }
 0x601   :  { %v894_v49 = vmul.f32 0.00048828125, %v893_v48 }
 0x603   :  { %v896_v50 = vadd.f32 %v895_v47, %v894_v49 }
 0x605   :  { %v902_v57 = vsel %vm901_vm9, %v896_v50, 0.0 }
 0x606   :  { %v903_v58 = vadd.f32 %v902_v57, %v897_v51  ;;  %v904_v59 = vadd.f32 %v902_v57, %v898_v52  ;;  %v905_v20 = vadd.f32 %v902_v57, %v899_v55  ;;  %v906_v53 = vadd.f32 %v902_v57, %v900_v56 }
 0x608   :  { %907 = vst [vmem:[%s1477_s2] sm:$0xff] %v903_v58 }
 0x609   :  { %908 = vst [vmem:[%s1477_s2 + $0x8] sm:$0xff] %v904_v59 }
 0x60a   :  { %909 = vst [vmem:[%s1477_s2 + $0x10] sm:$0xff] %v905_v20 }
 0x60b   :  { %910 = vst [vmem:[%s1477_s2 + $0x18] sm:$0xff] %v906_v53 }
 0x60c   :  { %915 = vsyncpa [#allocation3], 1 }

</bundles_post_ra>
